<compile_context>
chip_gen: v6e
topology: v6e:2x2x1
jax: 0.10.0
libtpu: 0.0.40
codegen_flags: <defaults>
</compile_context>

<pallas_src>
import functools

import jax
import jax.numpy as jnp
from jax import lax
from jax.experimental import pallas as pl
from jax.experimental.pallas import tpu as pltpu

EPS = 1e-5  # PyTorch BatchNorm2d default


# ----------------------------------------------------------------------------
# Pallas kernels
# ----------------------------------------------------------------------------
def _matmul_bias_kernel(x_ref, w_ref, b_ref, o_ref):
    # ConvTranspose2d(k=2, s=2): each of the 4 output sub-positions is an
    # independent (Cin -> Cout) matmul; they are packed along the lane dim.
    o_ref[...] = (jnp.dot(x_ref[...], w_ref[...],
                          preferred_element_type=jnp.float32)
                  + b_ref[...]).astype(o_ref.dtype)


def _dbb_relu_kernel(x_ref, w_ref, b_ref, o_ref, *, w_cols):
    """Folded DiverseBranchBlock (eval-mode BN) + ReLU on one row slab.

    x_ref : (1, (tH+2)*W, 3*Cm) bf16  dx-im2col'd, zero/ring-padded row slab
                                      (rows = h_local*W + w, 2-row dy halo)
    w_ref : (3, 3*Cm, Co)      bf16   folded per-dy weight (dx taps stacked on K)
    b_ref : (1, Co)            f32    folded bias of all four branches
    o_ref : (1, tH*W, Co)      f32
    """
    f32 = jnp.float32
    rout = o_ref.shape[1]                     # tH * W output rows
    xb = x_ref[0]                             # ((tH+2)*W, 3*Cm)
    # dy taps = row-shifted views of the halo slab (shift = W rows per dy).
    acc = jnp.dot(xb[0:rout], w_ref[0], preferred_element_type=f32)
    acc = acc + jnp.dot(xb[w_cols:w_cols + rout], w_ref[1],
                        preferred_element_type=f32)
    acc = acc + jnp.dot(xb[2 * w_cols:2 * w_cols + rout], w_ref[2],
                        preferred_element_type=f32)
    o_ref[0] = jnp.maximum(acc + b_ref[...], 0.0).astype(o_ref.dtype)


# ----------------------------------------------------------------------------
# Small helpers
# ----------------------------------------------------------------------------
def _largest_divisor_leq(n, cap, multiple=1):
    """Largest divisor of n that is <= cap and a multiple of `multiple`.
    Falls back to n (full extent is always a legal block)."""
    cap = max(1, min(n, cap))
    for d in range(cap, 0, -1):
        if n % d == 0 and d % multiple == 0:
            return d
    return n


def bn_fold(bn, eps=EPS):
    gamma, beta, mean, var = bn
    s = gamma / jnp.sqrt(var + eps)
    return s, beta - mean * s


# ----------------------------------------------------------------------------
# ConvTranspose2d(k=2, s=2) as a tiled matmul
# ----------------------------------------------------------------------------
def conv_transpose_2x2(x_nhwc, w, b, target_rows=1024):
    """nn.ConvTranspose2d(Cin, Cout, kernel_size=2, stride=2). w: (Cin, Cout, 2, 2)."""
    N, H, W, Cin = x_nhwc.shape
    Cout = w.shape[1]
    M = N * H * W
    tm = _largest_divisor_leq(M, target_rows, multiple=8)

    x2d = x_nhwc.reshape(M, Cin).astype(jnp.bfloat16)
    # pack the 4 (kh, kw) sub-position weight matrices along the output lanes
    w2d = jnp.transpose(w, (0, 2, 3, 1)).reshape(Cin, 4 * Cout).astype(jnp.bfloat16)
    b2d = jnp.tile(b, 4).reshape(1, 4 * Cout).astype(jnp.float32)

    out2d = pl.pallas_call(
        _matmul_bias_kernel,
        out_shape=jax.ShapeDtypeStruct((M, 4 * Cout), jnp.bfloat16),
        grid=(M // tm,),
        in_specs=[
            pl.BlockSpec((tm, Cin), lambda i: (i, 0)),
            pl.BlockSpec((Cin, 4 * Cout), lambda i: (0, 0)),
            pl.BlockSpec((1, 4 * Cout), lambda i: (0, 0)),
        ],
        out_specs=pl.BlockSpec((tm, 4 * Cout), lambda i: (i, 0)),
        compiler_params=pltpu.CompilerParams(
            dimension_semantics=("parallel",)),
    )(x2d, w2d, b2d)

    out = out2d.reshape(N, H, W, 2, 2, Cout)
    out = out.transpose(0, 1, 3, 2, 4, 5).reshape(N, 2 * H, 2 * W, Cout)
    return out


# ----------------------------------------------------------------------------
# DiverseBranchBlock(3x3, pad=1, deploy=False, eval BN) + ReLU, fully folded
# ----------------------------------------------------------------------------
def _fold_dbb_params(params, Cm):
    """Exact reparam of all 4 DBB branches into per-tap weight (3,3,Cm,Co) + bias."""
    sa, ba = bn_fold(params["origin_bn"])
    sb, bb = bn_fold(params["onexone_bn"])
    sc1, bc1 = bn_fold(params["avg_bnpad"])
    sc2, bc2 = bn_fold(params["avg_bn"])
    sd1, bd1 = bn_fold(params["kxk_bnpad"])
    sd2, bd2 = bn_fold(params["kxk_bn"])

    wa = jnp.transpose(params["origin_w"], (2, 3, 1, 0))     # (3,3,Cm,Co)
    wd2 = jnp.transpose(params["kxk_conv_w"], (2, 3, 1, 0))  # (3,3,Cm,Co)
    wb = params["onexone_w"][:, :, 0, 0].T                   # (Cm,Co)
    wc1 = params["avg_conv_w"][:, :, 0, 0].T                 # (Cm,Co)
    wd1 = (params["idconv_w"][:, :, 0, 0]
           + jnp.eye(Cm, dtype=jnp.float32)).T               # (Cm,Cm)
    wd1s = wd1 * sd1[None, :]                                 # BNAndPad scale on mid ch

    # origin + avg + 1x1_kxk folded per tap; BNAndPad ring == BN(0) (exact).
    wf = (wa * sa[None, None, None, :]
          + wc1[None, None] * (sc1 * sc2 / 9.0)[None, None, None, :]
          + jnp.einsum("ck,ijko->ijco", wd1s, wd2) * sd2[None, None, None, :])
    wf = wf.at[1, 1].add(wb * sb[None, :])                    # 1x1 branch -> center tap

    bias = (ba + bb
            + bc1 * sc2 + bc2                                  # avg branch constants
            + (bd1 @ wd2.sum(axis=(0, 1))) * sd2 + bd2)        # kxk ring/bias constants
    return wf, bias


def dbb_relu(y_nhwc, params, target_rows=1024):
    """DiverseBranchBlock(mid_ch, out_ch, k=3, s=1, p=1, deploy=False) + ReLU."""
    N, H, W, Cm = y_nhwc.shape
    Co = params["origin_w"].shape[0]
    tH = _largest_divisor_leq(H, max(1, target_rows // max(W, 1)))
    nH = H // tH
    rin = (tH + 2) * W
    rout = tH * W

    # --- input prep (XLA): zero pad, dx-direction im2col, dy row-halo slabs ---
    ypad = jnp.pad(y_nhwc.astype(jnp.bfloat16),
                   ((0, 0), (1, 1), (1, 1), (0, 0)))           # (N, H+2, W+2, Cm)
    # lanes = [dx=0 channels | dx=1 channels | dx=2 channels]
    xw = jnp.concatenate([ypad[:, :, dx:dx + W, :] for dx in range(3)],
                         axis=-1)                               # (N, H+2, W, 3*Cm)
    # row slabs with a 2-row halo per H block, flattened to 2-D per block
    slabs = jnp.stack([xw[:, hb * tH: hb * tH + tH + 2] for hb in range(nH)],
                      axis=1)                                   # (N, nH, tH+2, W, 3*Cm)
    xblk = slabs.reshape(N * nH, rin, 3 * Cm)

    # --- fold all four branches (exact under eval-mode BN) ---
    wf, bias = _fold_dbb_params(params, Cm)
    w_big = wf.reshape(3, 3 * Cm, Co).astype(jnp.bfloat16)      # per-dy, dx stacked on K
    bias2 = bias.reshape(1, Co).astype(jnp.float32)

    out = pl.pallas_call(
        functools.partial(_dbb_relu_kernel, w_cols=W),
        out_shape=jax.ShapeDtypeStruct((N * nH, rout, Co), jnp.float32),
        grid=(N * nH,),
        in_specs=[
            pl.BlockSpec((1, rin, 3 * Cm), lambda i: (i, 0, 0)),
            pl.BlockSpec((3, 3 * Cm, Co), lambda i: (0, 0, 0)),
            pl.BlockSpec((1, Co), lambda i: (0, 0)),
        ],
        out_specs=pl.BlockSpec((1, rout, Co), lambda i: (i, 0, 0)),
        compiler_params=pltpu.CompilerParams(
            dimension_semantics=("parallel",)),
    )(xblk, w_big, bias2)
    return out.reshape(N, H, W, Co)


# ----------------------------------------------------------------------------
# Decoder forward (scse=False)
# ----------------------------------------------------------------------------
def decoder_forward(params, x1_nchw, x2_nchw, direct_cat=False):
    """Decoder.forward(x1, x2): up(x1) -> cat(., x2) -> DBB+ReLU."""
    x1 = jnp.transpose(x1_nchw, (0, 2, 3, 1))      # NCHW -> NHWC
    x2 = jnp.transpose(x2_nchw, (0, 2, 3, 1))
    if not direct_cat:
        x1 = conv_transpose_2x2(x1, params["up_w"], params["up_b"])
    else:
        x1 = x1.astype(jnp.bfloat16)
    y = jnp.concatenate([x1, x2.astype(jnp.bfloat16)], axis=-1)  # cat(dim=1) in NCHW
    out = dbb_relu(y, params)
    return jnp.transpose(out, (0, 3, 1, 2))        # NHWC -> NCHW


# ----------------------------------------------------------------------------
# Deterministic parameter init (shapes from the PyTorch __init__)
# ----------------------------------------------------------------------------
def bn_init(key, c):
    k1, k2, k3, k4 = jax.random.split(key, 4)
    gamma = 1.0 + 0.1 * jax.random.normal(k1, (c,), jnp.float32)
    beta = 0.1 * jax.random.normal(k2, (c,), jnp.float32)
    mean = 0.1 * jax.random.normal(k3, (c,), jnp.float32)
    var = 0.5 + jax.random.uniform(k4, (c,), jnp.float32)
    return (gamma, beta, mean, var)


def init_decoder_params(key, in_ch, mid_ch, out_ch):
    ks = jax.random.split(key, 13)
    r = lambda k, s: 0.2 * jax.random.normal(k, s, jnp.float32)
    return {
        "up_w": r(ks[0], (in_ch, out_ch, 2, 2)),        # ConvTranspose2d weight
        "up_b": r(ks[1], (out_ch,)),
        "origin_w": r(ks[2], (out_ch, mid_ch, 3, 3)),   # dbb_origin conv
        "origin_bn": bn_init(ks[3], out_ch),
        "onexone_w": r(ks[4], (out_ch, mid_ch, 1, 1)),  # dbb_1x1 conv
        "onexone_bn": bn_init(ks[5], out_ch),
        "avg_conv_w": r(ks[6], (out_ch, mid_ch, 1, 1)), # dbb_avg conv
        "avg_bnpad": bn_init(ks[7], out_ch),            # BNAndPadLayer
        "avg_bn": bn_init(ks[8], out_ch),               # avgbn
        "idconv_w": r(ks[9], (mid_ch, mid_ch, 1, 1)),   # IdentityBasedConv1x1
        "kxk_bnpad": bn_init(ks[10], mid_ch),           # BNAndPadLayer
        "kxk_conv_w": r(ks[11], (out_ch, mid_ch, 3, 3)),
        "kxk_bn": bn_init(ks[12], out_ch),
    }


# ----------------------------------------------------------------------------
# Pure-JAX (non-Pallas) f32 reference for verification
# ----------------------------------------------------------------------------
def _conv_nchw(x, w, pad):
    return lax.conv_general_dilated(x, w, (1, 1), ((pad, pad), (pad, pad)),
                                    dimension_numbers=("NCHW", "OIHW", "NCHW"))


def _bn_eval(x, bn, eps=EPS):
    gamma, beta, mean, var = bn
    s = (gamma / jnp.sqrt(var + eps)).reshape(1, -1, 1, 1)
    b = (beta - mean * gamma / jnp.sqrt(var + eps)).reshape(1, -1, 1, 1)
    return x * s + b


def _bn_and_pad(x, bn, pad, eps=EPS):
    gamma, beta, mean, var = bn
    out = _bn_eval(x, bn, eps)
    pad_vals = (beta - mean * gamma / jnp.sqrt(var + eps)).reshape(1, -1, 1, 1)
    N, C, H, W = out.shape
    padded = jnp.broadcast_to(pad_vals, (N, C, H + 2 * pad, W + 2 * pad))
    return padded.at[:, :, pad:pad + H, pad:pad + W].set(out)


def decoder_reference(params, x1, x2):
    N, Ci, H1, W1 = x1.shape
    Co = params["up_w"].shape[1]
    up = jnp.einsum("nihw,iokl->nohkwl", x1, params["up_w"])
    up = up.reshape(N, Co, 2 * H1, 2 * W1) + params["up_b"].reshape(1, -1, 1, 1)
    y = jnp.concatenate([up, x2], axis=1)
    a = _bn_eval(_conv_nchw(y, params["origin_w"], 1), params["origin_bn"])
    b = _bn_eval(_conv_nchw(y, params["onexone_w"], 0), params["onexone_bn"])
    c = _conv_nchw(y, params["avg_conv_w"], 0)
    c = _bn_and_pad(c, params["avg_bnpad"], 1)
    c = lax.reduce_window(c, 0.0, lax.add, (1, 1, 3, 3), (1, 1, 1, 1), "VALID") / 9.0
    c = _bn_eval(c, params["avg_bn"])
    mid = params["idconv_w"].shape[0]
    idw = params["idconv_w"] + jnp.eye(mid, dtype=jnp.float32).reshape(mid, mid, 1, 1)
    d = _conv_nchw(y, idw, 0)
    d = _bn_and_pad(d, params["kxk_bnpad"], 1)
    d = _conv_nchw(d, params["kxk_conv_w"], 0)
    d = _bn_eval(d, params["kxk_bn"])
    return jax.nn.relu(a + b + c + d)


# ----------------------------------------------------------------------------
if __name__ == "__main__":
    key = jax.random.PRNGKey(0)
    N, in_ch, H1, W1 = 2, 8, 8, 8      # x1: pre-upsample feature map
    skip_ch, out_ch = 4, 4
    mid_ch = out_ch + skip_ch           # channels after concat(up(x1), x2)

    kx1, kx2, kp = jax.random.split(key, 3)
    x1 = jax.random.normal(kx1, (N, in_ch, H1, W1), jnp.float32)
    x2 = jax.random.normal(kx2, (N, skip_ch, 2 * H1, 2 * W1), jnp.float32)
    params = init_decoder_params(kp, in_ch, mid_ch, out_ch)

    out = jax.jit(decoder_forward)(params, x1, x2)
    out = jax.block_until_ready(out)

    ref = decoder_reference(params, x1, x2)
    assert out.shape == ref.shape == (N, out_ch, 2 * H1, 2 * W1)
    # bf16 MXU inputs (f32 accumulation) vs. pure-f32 reference -> ~1e-2-scale
    # absolute deviations on O(1..5) outputs are expected.
    err = float(jnp.max(jnp.abs(out - ref)))
    assert err < 1.5e-1, f"max abs err {err}"
    print("KERNEL_OK")
</pallas_src>

<mosaic_0001>
module attributes {stable_mosaic.version = 11 : i64} {
  func.func @_matmul_bias_kernel(%arg0: i32, %arg1: memref<128x8xbf16, #tpu.memory_space<vmem>>, %arg2: memref<8x16xbf16, #tpu.memory_space<vmem>>, %arg3: memref<1x16xf32, #tpu.memory_space<vmem>>, %arg4: memref<128x16xbf16, #tpu.memory_space<vmem>>) attributes {dimension_semantics = [#tpu.dimension_semantics<parallel>], iteration_bounds = array<i64: 1>, scalar_prefetch = 0 : i64, scratch_operands = 0 : i64, tpu.core_type = #tpu.core_type<tc>, window_params = [{transform_indices = @transform_0, window_bounds = array<i64: 128, 8>}, {pipeline_mode = #tpu.pipeline_mode<synchronous>, transform_indices = @transform_1, window_bounds = array<i64: 8, 16>}, {pipeline_mode = #tpu.pipeline_mode<synchronous>, transform_indices = @transform_2, window_bounds = array<i64: 1, 16>}, {transform_indices = @transform_3, window_bounds = array<i64: 128, 16>}]} {
    %c0 = arith.constant 0 : index
    %c0_0 = arith.constant 0 : index
    %0 = vector.load %arg1[%c0, %c0_0] : memref<128x8xbf16, #tpu.memory_space<vmem>>, vector<128x8xbf16>
    %c0_1 = arith.constant 0 : index
    %c0_2 = arith.constant 0 : index
    %1 = vector.load %arg2[%c0_1, %c0_2] : memref<8x16xbf16, #tpu.memory_space<vmem>>, vector<8x16xbf16>
    %cst = arith.constant dense<0.000000e+00> : vector<128x16xf32>
    %2 = tpu.matmul %0, %1, %cst {dimension_numbers = #tpu.dot_dimension_numbers<[1], [0], [0], [1], [0, 0, 1, 1], [], []>} : vector<128x8xbf16>, vector<8x16xbf16>, vector<128x16xf32> -> vector<128x16xf32>
    %c0_3 = arith.constant 0 : index
    %c0_4 = arith.constant 0 : index
    %3 = vector.load %arg3[%c0_3, %c0_4] : memref<1x16xf32, #tpu.memory_space<vmem>>, vector<1x16xf32>
    %4 = vector.broadcast %3 : vector<1x16xf32> to vector<128x16xf32>
    %5 = arith.addf %2, %4 : vector<128x16xf32>
    %6 = arith.truncf %5 : vector<128x16xf32> to vector<128x16xbf16>
    %c0_5 = arith.constant 0 : index
    %c0_6 = arith.constant 0 : index
    %7 = vector.load %arg4[%c0_5, %c0_6] : memref<128x16xbf16, #tpu.memory_space<vmem>>, vector<128x16xbf16>
    tpu.vector_store %arg4[%c0_5, %c0_6], %6 {strides = array<i32>} : memref<128x16xbf16, #tpu.memory_space<vmem>>, vector<128x16xbf16>,
    return
  }
  func.func @transform_0(%arg0: i32) -> (i32, i32) {
    %c0_i32 = arith.constant 0 : i32
    %c0_i32_0 = arith.constant 0 : i32
    return %arg0, %c0_i32 : i32, i32
  }
  func.func @transform_1(%arg0: i32) -> (i32, i32) {
    %c0_i32 = arith.constant 0 : i32
    %c0_i32_0 = arith.constant 0 : i32
    %c0_i32_1 = arith.constant 0 : i32
    return %c0_i32, %c0_i32_0 : i32, i32
  }
  func.func @transform_2(%arg0: i32) -> (i32, i32) {
    %c0_i32 = arith.constant 0 : i32
    %c0_i32_0 = arith.constant 0 : i32
    %c0_i32_1 = arith.constant 0 : i32
    return %c0_i32, %c0_i32_0 : i32, i32
  }
  func.func @transform_3(%arg0: i32) -> (i32, i32) {
    %c0_i32 = arith.constant 0 : i32
    %c0_i32_0 = arith.constant 0 : i32
    return %arg0, %c0_i32 : i32, i32
  }
}

module attributes {stable_mosaic.version = 11 : i64} {
  func.func @_dbb_relu_kernel(%arg0: i32, %arg1: memref<1x288x24xbf16, #tpu.memory_space<vmem>>, %arg2: memref<3x24x4xbf16, #tpu.memory_space<vmem>>, %arg3: memref<1x4xf32, #tpu.memory_space<vmem>>, %arg4: memref<1x256x4xf32, #tpu.memory_space<vmem>>) attributes {dimension_semantics = [#tpu.dimension_semantics<parallel>], iteration_bounds = array<i64: 2>, scalar_prefetch = 0 : i64, scratch_operands = 0 : i64, tpu.core_type = #tpu.core_type<tc>, window_params = [{transform_indices = @transform_0, window_bounds = array<i64: 1, 288, 24>}, {pipeline_mode = #tpu.pipeline_mode<synchronous>, transform_indices = @transform_1, window_bounds = array<i64: 3, 24, 4>}, {pipeline_mode = #tpu.pipeline_mode<synchronous>, transform_indices = @transform_2, window_bounds = array<i64: 1, 4>}, {transform_indices = @transform_3, window_bounds = array<i64: 1, 256, 4>}]} {
    %c0 = arith.constant 0 : index
    %c0_0 = arith.constant 0 : index
    %c0_1 = arith.constant 0 : index
    %0 = vector.load %arg1[%c0, %c0_0, %c0_1] : memref<1x288x24xbf16, #tpu.memory_space<vmem>>, vector<1x288x24xbf16>
    %1 = vector.shape_cast %0 : vector<1x288x24xbf16> to vector<288x24xbf16>
    %2 = vector.extract_strided_slice %1 {offsets = [0, 0], sizes = [256, 24], strides = [1, 1]} : vector<288x24xbf16> to vector<256x24xbf16>
    %c0_2 = arith.constant 0 : index
    %c0_3 = arith.constant 0 : index
    %c0_4 = arith.constant 0 : index
    %3 = vector.load %arg2[%c0_2, %c0_3, %c0_4] : memref<3x24x4xbf16, #tpu.memory_space<vmem>>, vector<1x24x4xbf16>
    %4 = vector.shape_cast %3 : vector<1x24x4xbf16> to vector<24x4xbf16>
    %cst = arith.constant dense<0.000000e+00> : vector<256x4xf32>
    %5 = tpu.matmul %2, %4, %cst {dimension_numbers = #tpu.dot_dimension_numbers<[1], [0], [0], [1], [0, 0, 1, 1], [], []>} : vector<256x24xbf16>, vector<24x4xbf16>, vector<256x4xf32> -> vector<256x4xf32>
    %6 = vector.extract_strided_slice %1 {offsets = [16, 0], sizes = [256, 24], strides = [1, 1]} : vector<288x24xbf16> to vector<256x24xbf16>
    %c1 = arith.constant 1 : index
    %c0_5 = arith.constant 0 : index
    %c0_6 = arith.constant 0 : index
    %7 = vector.load %arg2[%c1, %c0_5, %c0_6] : memref<3x24x4xbf16, #tpu.memory_space<vmem>>, vector<1x24x4xbf16>
    %8 = vector.shape_cast %7 : vector<1x24x4xbf16> to vector<24x4xbf16>
    %cst_7 = arith.constant dense<0.000000e+00> : vector<256x4xf32>
    %9 = tpu.matmul %6, %8, %cst_7 {dimension_numbers = #tpu.dot_dimension_numbers<[1], [0], [0], [1], [0, 0, 1, 1], [], []>} : vector<256x24xbf16>, vector<24x4xbf16>, vector<256x4xf32> -> vector<256x4xf32>
    %10 = arith.addf %5, %9 : vector<256x4xf32>
    %11 = vector.extract_strided_slice %1 {offsets = [32, 0], sizes = [256, 24], strides = [1, 1]} : vector<288x24xbf16> to vector<256x24xbf16>
    %c2 = arith.constant 2 : index
    %c0_8 = arith.constant 0 : index
    %c0_9 = arith.constant 0 : index
    %12 = vector.load %arg2[%c2, %c0_8, %c0_9] : memref<3x24x4xbf16, #tpu.memory_space<vmem>>, vector<1x24x4xbf16>
    %13 = vector.shape_cast %12 : vector<1x24x4xbf16> to vector<24x4xbf16>
    %cst_10 = arith.constant dense<0.000000e+00> : vector<256x4xf32>
    %14 = tpu.matmul %11, %13, %cst_10 {dimension_numbers = #tpu.dot_dimension_numbers<[1], [0], [0], [1], [0, 0, 1, 1], [], []>} : vector<256x24xbf16>, vector<24x4xbf16>, vector<256x4xf32> -> vector<256x4xf32>
    %15 = arith.addf %10, %14 : vector<256x4xf32>
    %c0_11 = arith.constant 0 : index
    %c0_12 = arith.constant 0 : index
    %16 = vector.load %arg3[%c0_11, %c0_12] : memref<1x4xf32, #tpu.memory_space<vmem>>, vector<1x4xf32>
    %17 = vector.broadcast %16 : vector<1x4xf32> to vector<256x4xf32>
    %18 = arith.addf %15, %17 : vector<256x4xf32>
    %cst_13 = arith.constant 0.000000e+00 : f32
    %19 = vector.broadcast %cst_13 : f32 to vector<256x4xf32>
    %20 = arith.maximumf %18, %19 : vector<256x4xf32>
    %c0_14 = arith.constant 0 : index
    %c0_15 = arith.constant 0 : index
    %c0_16 = arith.constant 0 : index
    %21 = vector.load %arg4[%c0_14, %c0_15, %c0_16] : memref<1x256x4xf32, #tpu.memory_space<vmem>>, vector<1x256x4xf32>
    %22 = vector.shape_cast %21 : vector<1x256x4xf32> to vector<256x4xf32>
    %23 = vector.shape_cast %20 : vector<256x4xf32> to vector<1x256x4xf32>
    tpu.vector_store %arg4[%c0_14, %c0_15, %c0_16], %23 {strides = array<i32>} : memref<1x256x4xf32, #tpu.memory_space<vmem>>, vector<1x256x4xf32>,
    return
  }
  func.func @transform_0(%arg0: i32) -> (i32, i32, i32) {
    %c0_i32 = arith.constant 0 : i32
    %c0_i32_0 = arith.constant 0 : i32
    %c0_i32_1 = arith.constant 0 : i32
    return %arg0, %c0_i32, %c0_i32_0 : i32, i32, i32
  }
  func.func @transform_1(%arg0: i32) -> (i32, i32, i32) {
    %c0_i32 = arith.constant 0 : i32
    %c0_i32_0 = arith.constant 0 : i32
    %c0_i32_1 = arith.constant 0 : i32
    %c0_i32_2 = arith.constant 0 : i32
    return %c0_i32, %c0_i32_0, %c0_i32_1 : i32, i32, i32
  }
  func.func @transform_2(%arg0: i32) -> (i32, i32) {
    %c0_i32 = arith.constant 0 : i32
    %c0_i32_0 = arith.constant 0 : i32
    %c0_i32_1 = arith.constant 0 : i32
    return %c0_i32, %c0_i32_0 : i32, i32
  }
  func.func @transform_3(%arg0: i32) -> (i32, i32, i32) {
    %c0_i32 = arith.constant 0 : i32
    %c0_i32_0 = arith.constant 0 : i32
    %c0_i32_1 = arith.constant 0 : i32
    return %arg0, %c0_i32, %c0_i32_0 : i32, i32, i32
  }
}

</mosaic_0001>

<bundles_post_ra>
// kernel: tile.8
= control target key start
LH: loop header
LB: loop body
LE: loop exit
PB: predicated region body
PF: predicated region fallthrough
CT: control target
= control target key end

     0   :  { %s22_s0 = inlined_call_operand.vmem [shape: f32[4], index: 0, kind: input, shape index: {}]   ;;  %s23_s1 = inlined_call_operand.vmem [shape: f32[4,4], index: 1, kind: output, shape index: {}]  }
   0x1   :  { %v4_v0 = vld [vmem:[%s22_s0] ss:$0 sm:$0xff] }
   0x2   :  { %5 = vst [vmem:[%s23_s1] sm:$0xf] %v4_v0 }

// kernel: tile.9
= control target key start
LH: loop header
LB: loop body
LE: loop exit
PB: predicated region body
PF: predicated region fallthrough
CT: control target
= control target key end

     0   :  { %vm8_vm0 = vcmask 31744   ;;  %s40_s8 = smov 4   ;;  %s41_s9 = smov 8   ;;  %vm14_vm1 = vcmask 130144   ;;  %vm20_vm2 = vcmask 97344   ;;  %vm26_vm3 = vcmask 64544   ;;  %s58_s0 = inlined_call_operand.vmem [shape: f32[4,4], index: 0, kind: input, shape index: {}]   ;;  %s59_s1 = inlined_call_operand.vmem [shape: f32[1,16], index: 1, kind: output, shape index: {}]  }
   0x1   :  { %v5_v0 = vld [vmem:[%s58_s0] sm:$0xf]  ;;  %s39_s0 = smov 12  }
   0x2   :  { %6 = vst [vmem:[#allocation1] sm:$0xf] %v5_v0 }
   0x9   :  { %v11_v1 = vld [vmem:[#allocation1 + $0x3] sm:$0x1]   ;;  %v23_v2 = vld [vmem:[#allocation1 + $0x1] sm:$0x1]   ;;  %v7_v3 = vld [vmem:[#allocation1] sm:$0x1]  }
   0xa   :  { %12 = vrot.lane.b32.xlu0 %v11_v1, %s39_s0  ;;  %24 = vrot.lane.b32.xlu1 %v23_v2, %s40_s8  ;;  %v17_v4 = vld [vmem:[#allocation1 + $0x2] sm:$0x1]   ;;  %9 = vst.msk [vmem:[#allocation0] sm:$0x1] %vm8_vm0, %v7_v3  }
   0xe   :  { %18 = vrot.lane.b32.xlu0 %v17_v4, %s41_s9 }
  0x7c   :  { %v13_v5 = vpop.permute.xlu0 %12   ;;  %v25_v6 = vpop.permute.xlu1 %24  }
  0x7d   :  { %15 = vst.msk [vmem:[#allocation0] sm:$0x1] %vm14_vm1, %v13_v5  }
  0x80   :  { %v19_v7 = vpop.permute.xlu0 %18  }
  0x81   :  { %21 = vst.msk [vmem:[#allocation0] sm:$0x1] %vm20_vm2, %v19_v7  }
  0x82   :  { %27 = vst.msk [vmem:[#allocation0] sm:$0x1] %vm26_vm3, %v25_v6  }
  0x89   :  { %v32_v8 = vld [vmem:[#allocation0] sm:$0x1] }
  0x8a   :  { %35 = vst [vmem:[%s59_s1] sm:$0x1] %v32_v8 }

// kernel: decoder_forward.2
= control target key start
LH: loop header
LB: loop body
LE: loop exit
PB: predicated region body
PF: predicated region fallthrough
CT: control target
= control target key end

     0   :  { %vm104_vm0 = vcmask 1043456   ;;  %vm79_vm1 = vcmask 64512   ;;  %vm269_vm2 = vcmask 125952   ;;  %s500_s1 = inlined_call_operand.vmem [shape: bf16[8,16], index: 1, kind: input, shape index: {}]   ;;  %s501_s0 = inlined_call_operand.vmem [shape: bf16[128,8], index: 0, kind: input, shape index: {}]   ;;  %s502_s2 = inlined_call_operand.vmem [shape: f32[1,16], index: 2, kind: input, shape index: {}]   ;;  %s503_s3 = inlined_call_operand.vmem [shape: bf16[128,16], index: 3, kind: output, shape index: {}]  }
   0x1   :  { %v31_v0 = vld [vmem:[%s500_s1] sm:$0xf]  ;;  %v372_v4 = vld [vmem:[%s501_s0 + $0x8] sm:$0xff]   ;;  %v374_v6 = vld [vmem:[%s501_s0 + $0x10] sm:$0xff]  }
   0x2   :  { %368 = vmatprep.subr.msk.bf16.mxu0 %vm104_vm0, %v31_v0  ;;  %369 = vmatprep.subr.msk.bf16.mxu1 %vm104_vm0, %v31_v0  ;;  %v106_v1 = vsel %vm104_vm0, %v31_v0, 0  ;;  %v370_v2 = vld [vmem:[%s501_s0] sm:$0xff]   ;;  %v373_v5 = vld [vmem:[%s501_s0 + $0x28] sm:$0xff]   ;;  %v375_v7 = vld [vmem:[%s501_s0 + $0x30] sm:$0xff]  }
   0x3   :  { %349 = vmatpush3.bf16.msra.mxu0 %v106_v1  ;;  %367 = vmatpush3.bf16.msra.mxu1 %v106_v1  ;;  %v371_v3 = vld [vmem:[%s501_s0 + $0x20] sm:$0xff]   ;;  %v376_v8 = vld [vmem:[%s501_s0 + $0x18] sm:$0xff]  }
   0x4   :  { %350 = vmatprep.mubr.msk.bf16.mxu0 %vm79_vm1, %v370_v2  ;;  %358 = vmatprep.mubr.msk.bf16.mxu1 %vm79_vm1, %v371_v3  ;;  %v377_v9 = vld [vmem:[%s501_s0 + $0x38] sm:$0xff]   ;;  %v290_v10 = vld [vmem:[%s502_s2] ss:$0 sm:$0xff] }
   0x6   :  { %351 = vmatmul.mubr.msk.bf16.vlgmr.msra.gmra.mxu0 %vm79_vm1, %v372_v4  ;;  %359 = vmatmul.mubr.msk.bf16.vlgmr.msra.gmra.mxu1 %vm79_vm1, %v373_v5 }
   0x7   :  { %354 = vmatprep.mubr.msk.bf16.mxu0 %vm79_vm1, %v374_v6  ;;  %362 = vmatprep.mubr.msk.bf16.mxu1 %vm79_vm1, %v375_v7 }
   0xe   :  { %355 = vmatmul.mubr.msk.bf16.gmra.mxu0 %vm79_vm1, %v376_v8  ;;  %363 = vmatmul.mubr.msk.bf16.gmra.mxu1 %vm79_vm1, %v377_v9 }
  0xc6   :  { %v352_v11 = vpop.f32.mrf.mxu0  ;;  %v360_v13 = vpop.f32.mrf.mxu1 }
  0xc7   :  { %v151_v12 = vadd.f32 %v352_v11, %v290_v10  ;;  %v183_v14 = vadd.f32 %v360_v13, %v290_v10 }
  0xc8   :  { %v142_v15 = vpop.f32.mrf.mxu0  ;;  %v174_v18 = vpop.f32.mrf.mxu1 }
  0xc9   :  { %v325_v16 = vpack.c.bf16 %v151_v12, %v151_v12  ;;  %v143_v17 = vadd.f32 %v290_v10, %v142_v15  ;;  %v333_v19 = vpack.c.bf16 %v183_v14, %v183_v14  ;;  %v175_v20 = vadd.f32 %v290_v10, %v174_v18 }
  0xca   :  { %v353_v21 = vpop.f32.mrf.mxu0  ;;  %v361_v24 = vpop.f32.mrf.mxu1 }
  0xcb   :  { %272 = vst.msk [vmem:[%s503_s3 + $0x8] sm:$0xf] %vm269_vm2, %v325_v16  ;;  %v323_v22 = vpack.c.bf16 %v143_v17, %v143_v17  ;;  %v154_v23 = vadd.f32 %v353_v21, %v290_v10  ;;  %280 = vst.msk [vmem:[%s503_s3 + $0x28] sm:$0xf] %vm269_vm2, %v333_v19  ;;  %v331_v25 = vpack.c.bf16 %v175_v20, %v175_v20 }
  0xcc   :  { %v186_v26 = vadd.f32 %v361_v24, %v290_v10  ;;  %v145_v27 = vpop.f32.mrf.mxu0  ;;  %v177_v30 = vpop.f32.mrf.mxu1 }
  0xcd   :  { %270 = vst.msk [vmem:[%s503_s3] sm:$0xf] %vm269_vm2, %v323_v22  ;;  %v326_v28 = vpack.c.bf16 %v154_v23, %v154_v23  ;;  %v146_v29 = vadd.f32 %v290_v10, %v145_v27  ;;  %278 = vst.msk [vmem:[%s503_s3 + $0x20] sm:$0xf] %vm269_vm2, %v331_v25  ;;  %v178_v32 = vadd.f32 %v290_v10, %v177_v30 }
  0xce   :  { %v334_v31 = vpack.c.bf16 %v186_v26, %v186_v26  ;;  %v356_v33 = vpop.f32.mrf.mxu0  ;;  %v364_v36 = vpop.f32.mrf.mxu1 }
  0xcf   :  { %273 = vst.msk [vmem:[%s503_s3 + $0xc] sm:$0xf] %vm269_vm2, %v326_v28  ;;  %v324_v34 = vpack.c.bf16 %v146_v29, %v146_v29  ;;  %v167_v35 = vadd.f32 %v356_v33, %v290_v10  ;;  %v332_v37 = vpack.c.bf16 %v178_v32, %v178_v32  ;;  %v199_v38 = vadd.f32 %v364_v36, %v290_v10 }
  0xd0   :  { %281 = vst.msk [vmem:[%s503_s3 + $0x2c] sm:$0xf] %vm269_vm2, %v334_v31  ;;  %v158_v39 = vpop.f32.mrf.mxu0  ;;  %v190_v42 = vpop.f32.mrf.mxu1 }
  0xd1   :  { %271 = vst.msk [vmem:[%s503_s3 + $0x4] sm:$0xf] %vm269_vm2, %v324_v34  ;;  %v329_v40 = vpack.c.bf16 %v167_v35, %v167_v35  ;;  %v159_v41 = vadd.f32 %v290_v10, %v158_v39  ;;  %279 = vst.msk [vmem:[%s503_s3 + $0x24] sm:$0xf] %vm269_vm2, %v332_v37  ;;  %v337_v43 = vpack.c.bf16 %v199_v38, %v199_v38 }
  0xd2   :  { %v191_v44 = vadd.f32 %v290_v10, %v190_v42  ;;  %v357_v45 = vpop.f32.mrf.mxu0  ;;  %v365_v48 = vpop.f32.mrf.mxu1 }
  0xd3   :  { %276 = vst.msk [vmem:[%s503_s3 + $0x18] sm:$0xf] %vm269_vm2, %v329_v40  ;;  %v327_v46 = vpack.c.bf16 %v159_v41, %v159_v41  ;;  %v170_v47 = vadd.f32 %v357_v45, %v290_v10  ;;  %284 = vst.msk [vmem:[%s503_s3 + $0x38] sm:$0xf] %vm269_vm2, %v337_v43  ;;  %v202_v50 = vadd.f32 %v365_v48, %v290_v10 }
  0xd4   :  { %v335_v49 = vpack.c.bf16 %v191_v44, %v191_v44  ;;  %v161_v51 = vpop.f32.mrf.mxu0  ;;  %v193_v54 = vpop.f32.mrf.mxu1 }
  0xd5   :  { %274 = vst.msk [vmem:[%s503_s3 + $0x10] sm:$0xf] %vm269_vm2, %v327_v46  ;;  %v330_v52 = vpack.c.bf16 %v170_v47, %v170_v47  ;;  %v162_v53 = vadd.f32 %v290_v10, %v161_v51  ;;  %v338_v55 = vpack.c.bf16 %v202_v50, %v202_v50  ;;  %v194_v56 = vadd.f32 %v290_v10, %v193_v54 }
  0xd6   :  { %282 = vst.msk [vmem:[%s503_s3 + $0x30] sm:$0xf] %vm269_vm2, %v335_v49 }
  0xd7   :  { %277 = vst.msk [vmem:[%s503_s3 + $0x1c] sm:$0xf] %vm269_vm2, %v330_v52  ;;  %v328_v57 = vpack.c.bf16 %v162_v53, %v162_v53  ;;  %285 = vst.msk [vmem:[%s503_s3 + $0x3c] sm:$0xf] %vm269_vm2, %v338_v55  ;;  %v336_v58 = vpack.c.bf16 %v194_v56, %v194_v56 }
  0xd9   :  { %275 = vst.msk [vmem:[%s503_s3 + $0x14] sm:$0xf] %vm269_vm2, %v328_v57  ;;  %283 = vst.msk [vmem:[%s503_s3 + $0x34] sm:$0xf] %vm269_vm2, %v336_v58 }

// kernel: decoder_forward.3
= control target key start
LH: loop header
LB: loop body
LE: loop exit
PB: predicated region body
PF: predicated region fallthrough
CT: control target
= control target key end

     0   :  { %s1396_s12 = smov 0   ;;  %s1688_s0 = inlined_call_operand.vmem [shape: bf16[2,288,24], index: 0, kind: input, shape index: {}]   ;;  %s1689_s1 = inlined_call_operand.vmem [shape: bf16[3,24,4], index: 1, kind: input, shape index: {}]   ;;  %s1690_s2 = inlined_call_operand.vmem [shape: f32[1,4], index: 2, kind: input, shape index: {}]   ;;  %s1691_s3 = inlined_call_operand.vmem [shape: f32[2,256,4], index: 3, kind: output, shape index: {}]  }
   0x1 LB: > { %s1075_s13 = sadd.s32 4294967295, %s1374_s12   ;;  %p1079_p0 = scmp.ge.s32.totalorder %s1374_s12, 1  ;;  %s1374_s12 = sphi %s1396_s12, %s13_s12  }
   0x2   : > { %p137_p1 = scmp.lt.s32.totalorder %s1374_s12, 3 }
   0x4   : > { %p138_p2 = pnand %p1079_p0, %p137_p1 }
   0x5   : > { %p161_p3 = scmp.lt.s32.totalorder (!%p138_p2), %s1075_s13, 1 }
   0x6   : > { %141 = sbr.rel (%p138_p2) target bundleno = 316 (0x13c), region = 32 }
   0xb   : > { %v1344_v0 = vld [vmem:[%s1689_s1 + $0x14] ss:$0 sps:$4 sm:$0xff]   ;;  %vm353_vm0 = vcmask 1043456   ;;  %v1345_v1 = vld [vmem:[%s1689_s1 + $0xc] sm:$0xff]   ;;  %s1693_s13 = smov (!%p161_p3, %s1075_s13), 1  ;;  %vm304_vm1 = vcmask 195584  }
   0xc   : > { %1331 = vmatprep.subr.msk.bf16.mxu0 %vm353_vm0, %v1344_v0  ;;  %1332 = vmatprep.subr.msk.bf16.mxu1 %vm353_vm0, %v1344_v0  ;;  %v355_v2 = vsel %vm353_vm0, %v1344_v0, 0  ;;  %v1350_v3 = vld [vmem:[%s1689_s1 + $0x8] ss:$0 sps:$4 sm:$0xff]   ;;  %v1351_v4 = vld [vmem:[%s1689_s1 + $0x20] ss:$0 sps:$4 sm:$0xff]   ;;  %s1335_s22 = smul.u32 144, %s1693_s13 }
   0xd   : > { %1220 = vmatpush3.bf16.msra.mxu0 %v355_v2  ;;  %1329 = vmatpush3.bf16.msra.mxu1 %v355_v2  ;;  %v1360_v7 = vld [vmem:[%s1689_s1] sm:$0xff]   ;;  %v721_v9 = vsel %vm353_vm0, %v1351_v4, 0  ;;  %v1361_v10 = vld [vmem:[%s1689_s1 + $0x18] sm:$0xff]   ;;  %v536_v12 = vsel %vm353_vm0, %v1350_v3, 0  ;;  %s1164_s5 = sshll.u32 %s1693_s13, 8  ;;  %vm987_vm2 = vcmask 31744  }
   0xe   : > { %1221 = vmatprep.subr.bf16.mxu0 %v1345_v1  ;;  %1328 = vmatprep.subr.bf16.mxu1 %v1345_v1  ;;  %s1425_s25 = scalar_lea.vmem %s1688_s0, %s1335_s22  ;;  %v1556_v63 = vld [vmem:[%s1690_s2] ss:$0 sm:$0xff]  ;;  %s1563_s8 = scalar_lea.vmem %s1691_s3, %s1164_s5 }
   0xf   : > { %v1346_v5 = vld [vmem:[%s1425_s25 + $0x8] sm:$0xff]   ;;  %v1348_v8 = vld [vmem:[%s1425_s25 + $0x10] sm:$0xff]   ;;  %v1352_v13 = vld [vmem:[%s1425_s25 + $0x18] sm:$0xff]  }
  0x10   : > { %v1347_v6 = vld [vmem:[%s1425_s25 + $0x48] sm:$0xff]   ;;  %1223 = vmatprep.mubr.msk.bf16.mxu0 %vm304_vm1, %v1346_v5  ;;  %v1349_v11 = vld [vmem:[%s1425_s25 + $0x50] sm:$0xff]   ;;  %v1353_v14 = vld [vmem:[%s1425_s25 + $0x58] sm:$0xff]  }
  0x11   : > { %1222 = vmatpush3.bf16.msra.mxu0 %v1345_v1  ;;  %1330 = vmatpush3.bf16.msra.mxu1 %v1345_v1  ;;  %v1354_v15 = vld [vmem:[%s1425_s25 + $0x20] sm:$0xff]   ;;  %v1356_v17 = vld [vmem:[%s1425_s25 + $0x28] sm:$0xff]   ;;  %v1358_v19 = vld [vmem:[%s1425_s25 + $0x30] sm:$0xff]  }
  0x12   : > { %1333 = vmatprep.subr.msk.bf16.mxu1 %vm353_vm0, %v1350_v3  ;;  %1334 = vmatprep.subr.msk.bf16.mxu0 %vm353_vm0, %v1351_v4  ;;  %v1355_v16 = vld [vmem:[%s1425_s25 + $0x60] sm:$0xff]   ;;  %v1357_v18 = vld [vmem:[%s1425_s25 + $0x68] sm:$0xff]   ;;  %v1359_v20 = vld [vmem:[%s1425_s25 + $0x70] sm:$0xff]  }
  0x13   : > { %1239 = vmatprep.mubr.msk.bf16.mxu1 %vm304_vm1, %v1347_v6  ;;  %v1362_v21 = vld [vmem:[%s1425_s25 + $0x38] sm:$0xff]   ;;  %v1364_v23 = vld [vmem:[%s1425_s25 + $0x40] sm:$0xff]   ;;  %v1367_v26 = vld [vmem:[%s1425_s25 + $0x88] sm:$0xff]  }
  0x14   : > { %1224 = vmatmul.mubr.msk.bf16.vlgmr.msra.gmra.mxu0 %vm304_vm1, %v1348_v8  ;;  %1240 = vmatmul.mubr.msk.bf16.vlgmr.msra.gmra.mxu1 %vm304_vm1, %v1349_v11  ;;  %v1363_v22 = vld [vmem:[%s1425_s25 + $0x78] sm:$0xff]   ;;  %v1365_v24 = vld [vmem:[%s1425_s25 + $0x80] sm:$0xff]  }
  0x15   : > { %1292 = vmatpush3.bf16.msra.mxu0 %v721_v9  ;;  %1256 = vmatpush3.bf16.msra.mxu1 %v536_v12  ;;  %v1366_v25 = vld [vmem:[%s1425_s25] sm:$0xff]  }
  0x16   : > { %1227 = vmatprep.mubr.msk.bf16.mxu0 %vm304_vm1, %v1352_v13  ;;  %1243 = vmatprep.mubr.msk.bf16.mxu1 %vm304_vm1, %v1353_v14 }
  0x17   : > { %1257 = vmatprep.subr.bf16.mxu1 %v1360_v7  ;;  %1293 = vmatprep.subr.bf16.mxu0 %v1361_v10 }
  0x19   : > { %1294 = vmatpush3.bf16.msra.mxu0 %v1361_v10  ;;  %1258 = vmatpush3.bf16.msra.mxu1 %v1360_v7 }
  0x1c   : > { %1228 = vmatmul.mubr.msk.bf16.gmra.mxu0 %vm304_vm1, %v1354_v15  ;;  %1244 = vmatmul.mubr.msk.bf16.gmra.mxu1 %vm304_vm1, %v1355_v16 }
  0x1d   : > { %1231 = vmatprep.mubr.msk.bf16.mxu0 %vm304_vm1, %v1356_v17  ;;  %1247 = vmatprep.mubr.msk.bf16.mxu1 %vm304_vm1, %v1357_v18 }
  0x24   : > { %1232 = vmatmul.mubr.msk.bf16.gmra.mxu0 %vm304_vm1, %v1358_v19  ;;  %1248 = vmatmul.mubr.msk.bf16.gmra.mxu1 %vm304_vm1, %v1359_v20 }
  0x25   : > { %1235 = vmatprep.mubr.msk.bf16.mxu0 %vm304_vm1, %v1362_v21  ;;  %1251 = vmatprep.mubr.msk.bf16.mxu1 %vm304_vm1, %v1363_v22 }
  0x2c   : > { %1236 = vmatmul.mubr.msk.bf16.gmra.mxu0 %vm304_vm1, %v1364_v23  ;;  %1252 = vmatmul.mubr.msk.bf16.gmra.mxu1 %vm304_vm1, %v1365_v24 }
  0x2d   : > { %1295 = vmatprep.mubr.msk.bf16.mxu0 %vm304_vm1, %v1348_v8  ;;  %1259 = vmatprep.mubr.msk.bf16.mxu1 %vm304_vm1, %v1366_v25 }
  0x34   : > { %1296 = vmatmul.mubr.msk.bf16.vlgmr.msra.gmra.mxu0 %vm304_vm1, %v1352_v13  ;;  %1260 = vmatmul.mubr.msk.bf16.vlgmr.msra.gmra.mxu1 %vm304_vm1, %v1346_v5 }
  0x35   : > { %1299 = vmatprep.mubr.msk.bf16.mxu0 %vm304_vm1, %v1354_v15  ;;  %1263 = vmatprep.mubr.msk.bf16.mxu1 %vm304_vm1, %v1348_v8 }
  0x3c   : > { %1300 = vmatmul.mubr.msk.bf16.gmra.mxu0 %vm304_vm1, %v1356_v17  ;;  %1264 = vmatmul.mubr.msk.bf16.gmra.mxu1 %vm304_vm1, %v1352_v13 }
  0x3d   : > { %1303 = vmatprep.mubr.msk.bf16.mxu0 %vm304_vm1, %v1358_v19  ;;  %1267 = vmatprep.mubr.msk.bf16.mxu1 %vm304_vm1, %v1354_v15 }
  0x44   : > { %1304 = vmatmul.mubr.msk.bf16.gmra.mxu0 %vm304_vm1, %v1362_v21  ;;  %1268 = vmatmul.mubr.msk.bf16.gmra.mxu1 %vm304_vm1, %v1356_v17 }
  0x45   : > { %1307 = vmatprep.mubr.msk.bf16.mxu0 %vm304_vm1, %v1364_v23  ;;  %1271 = vmatprep.mubr.msk.bf16.mxu1 %vm304_vm1, %v1358_v19 }
  0x4c   : > { %1308 = vmatmul.mubr.msk.bf16.gmra.mxu0 %vm304_vm1, %v1347_v6  ;;  %1272 = vmatmul.mubr.msk.bf16.gmra.mxu1 %vm304_vm1, %v1362_v21 }
  0x4d   : > { %1311 = vmatprep.mubr.msk.bf16.mxu0 %vm304_vm1, %v1349_v11  ;;  %1275 = vmatprep.mubr.msk.bf16.mxu1 %vm304_vm1, %v1364_v23 }
  0x54   : > { %1312 = vmatmul.mubr.msk.bf16.gmra.mxu0 %vm304_vm1, %v1353_v14  ;;  %1276 = vmatmul.mubr.msk.bf16.gmra.mxu1 %vm304_vm1, %v1347_v6 }
  0x55   : > { %1315 = vmatprep.mubr.msk.bf16.mxu0 %vm304_vm1, %v1355_v16  ;;  %1279 = vmatprep.mubr.msk.bf16.mxu1 %vm304_vm1, %v1349_v11 }
  0x5c   : > { %1316 = vmatmul.mubr.msk.bf16.gmra.mxu0 %vm304_vm1, %v1357_v18  ;;  %1280 = vmatmul.mubr.msk.bf16.gmra.mxu1 %vm304_vm1, %v1353_v14 }
  0x5d   : > { %1319 = vmatprep.mubr.msk.bf16.mxu0 %vm304_vm1, %v1359_v20  ;;  %1283 = vmatprep.mubr.msk.bf16.mxu1 %vm304_vm1, %v1355_v16 }
  0x64   : > { %1320 = vmatmul.mubr.msk.bf16.gmra.mxu0 %vm304_vm1, %v1363_v22  ;;  %1284 = vmatmul.mubr.msk.bf16.gmra.mxu1 %vm304_vm1, %v1357_v18 }
  0x65   : > { %1323 = vmatprep.mubr.msk.bf16.mxu0 %vm304_vm1, %v1365_v24  ;;  %1287 = vmatprep.mubr.msk.bf16.mxu1 %vm304_vm1, %v1359_v20 }
  0x6c   : > { %1324 = vmatmul.mubr.msk.bf16.gmra.mxu0 %vm304_vm1, %v1367_v26  ;;  %1288 = vmatmul.mubr.msk.bf16.gmra.mxu1 %vm304_vm1, %v1363_v22 }
  0xd4   : > { %v1225_v27 = vpop.f32.mrf.mxu0  ;;  %v1503_v28 = vpop.f32.mrf.mxu1 }
  0xd6   : > { %v391_v29 = vpop.f32.mrf.mxu0  ;;  %v1505_v30 = vpop.f32.mrf.mxu1 }
  0xd8   : > { %v1226_v31 = vpop.f32.mrf.mxu0  ;;  %v1507_v32 = vpop.f32.mrf.mxu1 }
  0xda   : > { %v394_v33 = vpop.f32.mrf.mxu0  ;;  %v1509_v34 = vpop.f32.mrf.mxu1 }
  0xdc   : > { %v1229_v35 = vpop.f32.mrf.mxu0  ;;  %v1511_v36 = vpop.f32.mrf.mxu1 }
  0xde   : > { %v407_v37 = vpop.f32.mrf.mxu0  ;;  %v1513_v38 = vpop.f32.mrf.mxu1 }
  0xe0   : > { %v1230_v39 = vpop.f32.mrf.mxu0  ;;  %v1515_v40 = vpop.f32.mrf.mxu1 }
  0xe2   : > { %v1517_v41 = vpop.f32.mrf.mxu0  ;;  %v1519_v42 = vpop.f32.mrf.mxu1 }
  0xe4   : > { %v1521_v43 = vpop.f32.mrf.mxu0  ;;  %v1523_v44 = vpop.f32.mrf.mxu1 }
  0xe6   : > { %v1525_v45 = vpop.f32.mrf.mxu0  ;;  %v1527_v46 = vpop.f32.mrf.mxu1 }
  0xe8   : > { %v1529_v47 = vpop.f32.mrf.mxu0  ;;  %v1531_v48 = vpop.f32.mrf.mxu1 }
  0xea   : > { %v1533_v49 = vpop.f32.mrf.mxu0  ;;  %v1535_v50 = vpop.f32.mrf.mxu1 }
  0xec   : > { %v1537_v51 = vpop.f32.mrf.mxu0  ;;  %v1539_v52 = vpop.f32.mrf.mxu1 }
  0xee   : > { %v1541_v53 = vpop.f32.mrf.mxu0  ;;  %v1543_v54 = vpop.f32.mrf.mxu1 }
  0xf0   : > { %v1545_v55 = vpop.f32.mrf.mxu0  ;;  %v1547_v56 = vpop.f32.mrf.mxu1 }
  0xf2   : > { %v1549_v57 = vpop.f32.mrf.mxu0  ;;  %v1551_v58 = vpop.f32.mrf.mxu1 }
  0xf4   : > { %v1297_v59 = vpop.f32.mrf.mxu0  ;;  %v1261_v60 = vpop.f32.mrf.mxu1 }
  0xf5   : > { %v581_v61 = vadd.f32 %v1261_v60, %v1225_v27 }
  0xf6   : > { %v757_v62 = vpop.f32.mrf.mxu0  ;;  %v572_v0 = vpop.f32.mrf.mxu1 }
  0xf7   : > { %v886_v1 = vadd.f32 %v1297_v59, %v581_v61  ;;  %v573_v2 = vadd.f32 %v572_v0, %v391_v29 }
  0xf8   : > { %v1298_v3 = vpop.f32.mrf.mxu0  ;;  %v1262_v4 = vpop.f32.mrf.mxu1 }
  0xf9   : > { %v925_v5 = vadd.f32 %v1556_v63, %v886_v1  ;;  %v884_v6 = vadd.f32 %v757_v62, %v573_v2  ;;  %v584_v7 = vadd.f32 %v1262_v4, %v1226_v31 }
  0xfa   : > { %v760_v8 = vpop.f32.mrf.mxu0  ;;  %v575_v9 = vpop.f32.mrf.mxu1 }
  0xfb   : > { %v957_v10 = vmax.f32 %v925_v5, 0.0  ;;  %v923_v11 = vadd.f32 %v1556_v63, %v884_v6  ;;  %v887_v12 = vadd.f32 %v1298_v3, %v584_v7  ;;  %v576_v13 = vadd.f32 %v575_v9, %v394_v33 }
  0xfc   : > { %v1301_v14 = vpop.f32.mrf.mxu0  ;;  %v1265_v15 = vpop.f32.mrf.mxu1 }
  0xfd   : > { %990 = vst.msk [vmem:[%s1563_s8 + $0x10] sm:$0xff] %vm987_vm2, %v957_v10  ;;  %v955_v16 = vmax.f32 %v923_v11, 0.0  ;;  %v926_v17 = vadd.f32 %v1556_v63, %v887_v12  ;;  %v885_v18 = vadd.f32 %v760_v8, %v576_v13  ;;  %v597_v19 = vadd.f32 %v1265_v15, %v1229_v35 }
  0xfe   : > { %v773_v20 = vpop.f32.mrf.mxu0  ;;  %v588_v21 = vpop.f32.mrf.mxu1 }
  0xff   : > { %988 = vst.msk [vmem:[%s1563_s8] sm:$0xff] %vm987_vm2, %v955_v16  ;;  %v958_v22 = vmax.f32 %v926_v17, 0.0  ;;  %v924_v23 = vadd.f32 %v1556_v63, %v885_v18  ;;  %v890_v24 = vadd.f32 %v1301_v14, %v597_v19  ;;  %v589_v25 = vadd.f32 %v588_v21, %v407_v37 }
 0x100   : > { %v1302_v26 = vpop.f32.mrf.mxu0  ;;  %v1266_v27 = vpop.f32.mrf.mxu1 }
 0x101   : > { %991 = vst.msk [vmem:[%s1563_s8 + $0x18] sm:$0xff] %vm987_vm2, %v958_v22  ;;  %v956_v29 = vmax.f32 %v924_v23, 0.0  ;;  %v929_v31 = vadd.f32 %v1556_v63, %v890_v24  ;;  %v888_v33 = vadd.f32 %v773_v20, %v589_v25  ;;  %v600_v35 = vadd.f32 %v1266_v27, %v1230_v39 }
 0x102   : > { %v776_v59 = vpop.f32.mrf.mxu0  ;;  %v591_v60 = vpop.f32.mrf.mxu1 }
 0x103   : > { %989 = vst.msk [vmem:[%s1563_s8 + $0x8] sm:$0xff] %vm987_vm2, %v956_v29  ;;  %v961_v61 = vmax.f32 %v929_v31, 0.0  ;;  %v927_v62 = vadd.f32 %v1556_v63, %v888_v33  ;;  %v891_v0 = vadd.f32 %v1302_v26, %v600_v35  ;;  %v592_v37 = vadd.f32 %v591_v60, %v1517_v41 }
 0x104   : > { %v1305_v1 = vpop.f32.mrf.mxu0  ;;  %v1269_v2 = vpop.f32.mrf.mxu1 }
 0x105   : > { %994 = vst.msk [vmem:[%s1563_s8 + $0x30] sm:$0xff] %vm987_vm2, %v961_v61  ;;  %v959_v3 = vmax.f32 %v927_v62, 0.0  ;;  %v930_v4 = vadd.f32 %v1556_v63, %v891_v0  ;;  %v889_v39 = vadd.f32 %v776_v59, %v592_v37  ;;  %v613_v5 = vadd.f32 %v1269_v2, %v1521_v43 }
 0x106   : > { %v789_v6 = vpop.f32.mrf.mxu0  ;;  %v604_v7 = vpop.f32.mrf.mxu1 }
 0x107   : > { %992 = vst.msk [vmem:[%s1563_s8 + $0x20] sm:$0xff] %vm987_vm2, %v959_v3  ;;  %v962_v8 = vmax.f32 %v930_v4, 0.0  ;;  %v928_v9 = vadd.f32 %v1556_v63, %v889_v39  ;;  %v894_v41 = vadd.f32 %v1305_v1, %v613_v5  ;;  %v605_v10 = vadd.f32 %v604_v7, %v1525_v45 }
 0x108   : > { %v1306_v11 = vpop.f32.mrf.mxu0  ;;  %v1270_v12 = vpop.f32.mrf.mxu1 }
 0x109   : > { %995 = vst.msk [vmem:[%s1563_s8 + $0x38] sm:$0xff] %vm987_vm2, %v962_v8  ;;  %v960_v13 = vmax.f32 %v928_v9, 0.0  ;;  %v933_v14 = vadd.f32 %v1556_v63, %v894_v41  ;;  %v892_v43 = vadd.f32 %v789_v6, %v605_v10  ;;  %v616_v15 = vadd.f32 %v1270_v12, %v1529_v47 }
 0x10a   : > { %v792_v16 = vpop.f32.mrf.mxu0  ;;  %v607_v17 = vpop.f32.mrf.mxu1 }
 0x10b   : > { %993 = vst.msk [vmem:[%s1563_s8 + $0x28] sm:$0xff] %vm987_vm2, %v960_v13  ;;  %v965_v18 = vmax.f32 %v933_v14, 0.0  ;;  %v931_v19 = vadd.f32 %v1556_v63, %v892_v43  ;;  %v895_v45 = vadd.f32 %v1306_v11, %v616_v15  ;;  %v608_v20 = vadd.f32 %v607_v17, %v1533_v49 }
 0x10c   : > { %v1309_v21 = vpop.f32.mrf.mxu0  ;;  %v1273_v22 = vpop.f32.mrf.mxu1 }
 0x10d   : > { %998 = vst.msk [vmem:[%s1563_s8 + $0x50] sm:$0xff] %vm987_vm2, %v965_v18  ;;  %v963_v23 = vmax.f32 %v931_v19, 0.0  ;;  %v934_v24 = vadd.f32 %v1556_v63, %v895_v45  ;;  %v893_v47 = vadd.f32 %v792_v16, %v608_v20  ;;  %v629_v25 = vadd.f32 %v1273_v22, %v1537_v51 }
 0x10e   : > { %v805_v26 = vpop.f32.mrf.mxu0  ;;  %v620_v27 = vpop.f32.mrf.mxu1 }
 0x10f   : > { %996 = vst.msk [vmem:[%s1563_s8 + $0x40] sm:$0xff] %vm987_vm2, %v963_v23  ;;  %v966_v29 = vmax.f32 %v934_v24, 0.0  ;;  %v932_v31 = vadd.f32 %v1556_v63, %v893_v47  ;;  %v898_v49 = vadd.f32 %v1309_v21, %v629_v25  ;;  %v621_v33 = vadd.f32 %v620_v27, %v1541_v53 }
 0x110   : > { %v1310_v35 = vpop.f32.mrf.mxu0  ;;  %v1274_v59 = vpop.f32.mrf.mxu1 }
 0x111   : > { %999 = vst.msk [vmem:[%s1563_s8 + $0x58] sm:$0xff] %vm987_vm2, %v966_v29  ;;  %v964_v60 = vmax.f32 %v932_v31, 0.0  ;;  %v937_v61 = vadd.f32 %v1556_v63, %v898_v49  ;;  %v896_v51 = vadd.f32 %v805_v26, %v621_v33  ;;  %v632_v62 = vadd.f32 %v1274_v59, %v1545_v55 }
 0x112   : > { %v808_v0 = vpop.f32.mrf.mxu0  ;;  %v623_v37 = vpop.f32.mrf.mxu1 }
 0x113   : > { %997 = vst.msk [vmem:[%s1563_s8 + $0x48] sm:$0xff] %vm987_vm2, %v964_v60  ;;  %v969_v1 = vmax.f32 %v937_v61, 0.0  ;;  %v935_v2 = vadd.f32 %v1556_v63, %v896_v51  ;;  %v899_v53 = vadd.f32 %v1310_v35, %v632_v62  ;;  %v624_v3 = vadd.f32 %v623_v37, %v1549_v57 }
 0x114   : > { %v1313_v4 = vpop.f32.mrf.mxu0  ;;  %v1277_v39 = vpop.f32.mrf.mxu1 }
 0x115   : > { %1002 = vst.msk [vmem:[%s1563_s8 + $0x70] sm:$0xff] %vm987_vm2, %v969_v1  ;;  %v967_v5 = vmax.f32 %v935_v2, 0.0  ;;  %v938_v6 = vadd.f32 %v1556_v63, %v899_v53  ;;  %v897_v55 = vadd.f32 %v808_v0, %v624_v3  ;;  %v645_v7 = vadd.f32 %v1277_v39, %v1503_v28 }
 0x116   : > { %v821_v8 = vpop.f32.mrf.mxu0  ;;  %v636_v9 = vpop.f32.mrf.mxu1 }
 0x117   : > { %1000 = vst.msk [vmem:[%s1563_s8 + $0x60] sm:$0xff] %vm987_vm2, %v967_v5  ;;  %v970_v41 = vmax.f32 %v938_v6, 0.0  ;;  %v936_v10 = vadd.f32 %v1556_v63, %v897_v55  ;;  %v902_v57 = vadd.f32 %v1313_v4, %v645_v7  ;;  %v637_v11 = vadd.f32 %v636_v9, %v1505_v30 }
 0x118   : > { %v1314_v12 = vpop.f32.mrf.mxu0  ;;  %v1278_v13 = vpop.f32.mrf.mxu1 }
 0x119   : > { %1003 = vst.msk [vmem:[%s1563_s8 + $0x78] sm:$0xff] %vm987_vm2, %v970_v41  ;;  %v968_v14 = vmax.f32 %v936_v10, 0.0  ;;  %v941_v43 = vadd.f32 %v1556_v63, %v902_v57  ;;  %v900_v28 = vadd.f32 %v821_v8, %v637_v11  ;;  %v648_v15 = vadd.f32 %v1278_v13, %v1507_v32 }
 0x11a   : > { %v824_v16 = vpop.f32.mrf.mxu0  ;;  %v639_v17 = vpop.f32.mrf.mxu1 }
 0x11b   : > { %1001 = vst.msk [vmem:[%s1563_s8 + $0x68] sm:$0xff] %vm987_vm2, %v968_v14  ;;  %v973_v18 = vmax.f32 %v941_v43, 0.0  ;;  %v939_v19 = vadd.f32 %v1556_v63, %v900_v28  ;;  %v903_v30 = vadd.f32 %v1314_v12, %v648_v15  ;;  %v640_v45 = vadd.f32 %v639_v17, %v1509_v34 }
 0x11c   : > { %v1317_v20 = vpop.f32.mrf.mxu0  ;;  %v1281_v21 = vpop.f32.mrf.mxu1 }
 0x11d   : > { %1006 = vst.msk [vmem:[%s1563_s8 + $0x90] sm:$0xff] %vm987_vm2, %v973_v18  ;;  %v971_v22 = vmax.f32 %v939_v19, 0.0  ;;  %v942_v23 = vadd.f32 %v1556_v63, %v903_v30  ;;  %v901_v32 = vadd.f32 %v824_v16, %v640_v45  ;;  %v661_v24 = vadd.f32 %v1281_v21, %v1511_v36 }
 0x11e   : > { %v837_v47 = vpop.f32.mrf.mxu0  ;;  %v652_v25 = vpop.f32.mrf.mxu1 }
 0x11f   : > { %1004 = vst.msk [vmem:[%s1563_s8 + $0x80] sm:$0xff] %vm987_vm2, %v971_v22  ;;  %v974_v26 = vmax.f32 %v942_v23, 0.0  ;;  %v940_v27 = vadd.f32 %v1556_v63, %v901_v32  ;;  %v906_v34 = vadd.f32 %v1317_v20, %v661_v24  ;;  %v653_v29 = vadd.f32 %v652_v25, %v1513_v38 }
 0x120   : > { %v1318_v31 = vpop.f32.mrf.mxu0  ;;  %v1282_v49 = vpop.f32.mrf.mxu1 }
 0x121   : > { %1007 = vst.msk [vmem:[%s1563_s8 + $0x98] sm:$0xff] %vm987_vm2, %v974_v26  ;;  %v972_v33 = vmax.f32 %v940_v27, 0.0  ;;  %v945_v35 = vadd.f32 %v1556_v63, %v906_v34  ;;  %v904_v36 = vadd.f32 %v837_v47, %v653_v29  ;;  %v664_v59 = vadd.f32 %v1282_v49, %v1515_v40 }
 0x122   : > { %v840_v60 = vpop.f32.mrf.mxu0  ;;  %v655_v61 = vpop.f32.mrf.mxu1 }
 0x123   : > { %1005 = vst.msk [vmem:[%s1563_s8 + $0x88] sm:$0xff] %vm987_vm2, %v972_v33  ;;  %v977_v51 = vmax.f32 %v945_v35, 0.0  ;;  %v943_v62 = vadd.f32 %v1556_v63, %v904_v36  ;;  %v907_v38 = vadd.f32 %v1318_v31, %v664_v59  ;;  %v656_v0 = vadd.f32 %v655_v61, %v1519_v42 }
 0x124   : > { %v1321_v37 = vpop.f32.mrf.mxu0  ;;  %v1285_v1 = vpop.f32.mrf.mxu1 }
 0x125   : > { %1010 = vst.msk [vmem:[%s1563_s8 + $0xb0] sm:$0xff] %vm987_vm2, %v977_v51  ;;  %v975_v2 = vmax.f32 %v943_v62, 0.0  ;;  %v946_v53 = vadd.f32 %v1556_v63, %v907_v38  ;;  %v905_v40 = vadd.f32 %v840_v60, %v656_v0  ;;  %v677_v3 = vadd.f32 %v1285_v1, %v1523_v44 }
 0x126   : > { %v853_v4 = vpop.f32.mrf.mxu0  ;;  %v668_v39 = vpop.f32.mrf.mxu1 }
 0x127   : > { %1008 = vst.msk [vmem:[%s1563_s8 + $0xa0] sm:$0xff] %vm987_vm2, %v975_v2  ;;  %v978_v5 = vmax.f32 %v946_v53, 0.0  ;;  %v944_v6 = vadd.f32 %v1556_v63, %v905_v40  ;;  %v910_v42 = vadd.f32 %v1321_v37, %v677_v3  ;;  %v669_v55 = vadd.f32 %v668_v39, %v1527_v46 }
 0x128   : > { %v1322_v7 = vpop.f32.mrf.mxu0  ;;  %v1286_v8 = vpop.f32.mrf.mxu1 }
 0x129   : > { %1011 = vst.msk [vmem:[%s1563_s8 + $0xb8] sm:$0xff] %vm987_vm2, %v978_v5  ;;  %v976_v9 = vmax.f32 %v944_v6, 0.0  ;;  %v949_v41 = vadd.f32 %v1556_v63, %v910_v42  ;;  %v908_v44 = vadd.f32 %v853_v4, %v669_v55  ;;  %v680_v10 = vadd.f32 %v1286_v8, %v1531_v48 }
 0x12a   : > { %v856_v57 = vpop.f32.mrf.mxu0  ;;  %v671_v11 = vpop.f32.mrf.mxu1 }
 0x12b   : > { %1009 = vst.msk [vmem:[%s1563_s8 + $0xa8] sm:$0xff] %vm987_vm2, %v976_v9  ;;  %v981_v12 = vmax.f32 %v949_v41, 0.0  ;;  %v947_v13 = vadd.f32 %v1556_v63, %v908_v44  ;;  %v911_v46 = vadd.f32 %v1322_v7, %v680_v10  ;;  %v672_v14 = vadd.f32 %v671_v11, %v1535_v50 }
 0x12c   : > { %v1325_v43 = vpop.f32.mrf.mxu0  ;;  %v1289_v28 = vpop.f32.mrf.mxu1 }
 0x12d   : > { %1014 = vst.msk [vmem:[%s1563_s8 + $0xd0] sm:$0xff] %vm987_vm2, %v981_v12  ;;  %v979_v15 = vmax.f32 %v947_v13, 0.0  ;;  %v950_v16 = vadd.f32 %v1556_v63, %v911_v46  ;;  %v909_v48 = vadd.f32 %v856_v57, %v672_v14  ;;  %v693_v17 = vadd.f32 %v1289_v28, %v1539_v52 }
 0x12e   : > { %v869_v18 = vpop.f32.mrf.mxu0  ;;  %v684_v19 = vpop.f32.mrf.mxu1 }
 0x12f   : > { %1012 = vst.msk [vmem:[%s1563_s8 + $0xc0] sm:$0xff] %vm987_vm2, %v979_v15  ;;  %v982_v30 = vmax.f32 %v950_v16, 0.0  ;;  %v948_v45 = vadd.f32 %v1556_v63, %v909_v48  ;;  %v914_v50 = vadd.f32 %v1325_v43, %v693_v17  ;;  %v685_v20 = vadd.f32 %v684_v19, %v1543_v54 }
 0x130   : > { %v1290_v21 = vpop.f32.mrf.mxu1  ;;  %v1326_v22 = vpop.f32.mrf.mxu0 }
 0x131   : > { %1015 = vst.msk [vmem:[%s1563_s8 + $0xd8] sm:$0xff] %vm987_vm2, %v982_v30  ;;  %v980_v23 = vmax.f32 %v948_v45, 0.0  ;;  %v953_v52 = vadd.f32 %v1556_v63, %v914_v50  ;;  %v912_v32 = vadd.f32 %v869_v18, %v685_v20  ;;  %v696_v24 = vadd.f32 %v1290_v21, %v1547_v56 }
 0x132   : > { %v687_v47 = vpop.f32.mrf.mxu1  ;;  %v872_v34 = vpop.f32.mrf.mxu0 }
 0x133   : > { %1013 = vst.msk [vmem:[%s1563_s8 + $0xc8] sm:$0xff] %vm987_vm2, %v980_v23  ;;  %v985_v25 = vmax.f32 %v953_v52, 0.0  ;;  %v951_v26 = vadd.f32 %v1556_v63, %v912_v32  ;;  %v915_v54 = vadd.f32 %v1326_v22, %v696_v24  ;;  %v688_v27 = vadd.f32 %v687_v47, %v1551_v58 }
 0x135   : > { %1018 = vst.msk [vmem:[%s1563_s8 + $0xf0] sm:$0xff] %vm987_vm2, %v985_v25  ;;  %v983_v29 = vmax.f32 %v951_v26, 0.0  ;;  %v954_v31 = vadd.f32 %v1556_v63, %v915_v54  ;;  %v913_v49 = vadd.f32 %v872_v34, %v688_v27 }
 0x137   : > { %1016 = vst.msk [vmem:[%s1563_s8 + $0xe0] sm:$0xff] %vm987_vm2, %v983_v29  ;;  %v986_v56 = vmax.f32 %v954_v31, 0.0  ;;  %v952_v33 = vadd.f32 %v1556_v63, %v913_v49 }
 0x139   : > { %1019 = vst.msk [vmem:[%s1563_s8 + $0xf8] sm:$0xff] %vm987_vm2, %v986_v56  ;;  %v984_v35 = vmax.f32 %v952_v33, 0.0 }
 0x13b   : > { %1017 = vst.msk [vmem:[%s1563_s8 + $0xe8] sm:$0xff] %vm987_vm2, %v984_v35 }
 0x13c PF: > { %s13_s12 = sadd.s32 1, %s1374_s12  }
 0x13d   : > { %p10_p4 = scmp.ge.s32.totalorder %s13_s12, 4  }
 0x13f   :  { %12 = sbr.rel (!%p10_p4) target bundleno = 1 (0x1), region = 64 }

</bundles_post_ra>
